<compile_context>
chip_gen: v7x
topology: tpu7x:2x2x1
jax: 0.10.0
libtpu: 0.0.40
codegen_flags: <defaults>
</compile_context>

<pallas_src>
import jax
import jax.numpy as jnp
from jax.experimental import pallas as pl
from jax.experimental.pallas import tpu as pltpu

_MAX_TILE_B = 1024     # 1024x256 bf16 x tile = 512 KiB (1 MiB double-buffered)
_LEAKY_SLOPE = 0.2


def _leaky_relu(x, slope=_LEAKY_SLOPE):
    # For slope in (0, 1) identical to where(x > 0, x, slope * x), but lowers
    # to one vmul + one vmax instead of cmp + select.
    return jnp.maximum(x, slope * x)


def discriminator_kernel(x_ref,
                         w1_ref, b1_ref,
                         w2_ref, b2_ref,
                         w3_ref, b3_ref,
                         w4_ref, b4_ref,
                         o_ref):
    """Fused 4-layer MLP on one batch tile: (tile_b, D) bf16 -> (1, tile_b) f32."""
    x = x_ref[...]                                     # bf16 MXU operand

    # linear_1 + LeakyReLU(0.2)
    h = jnp.dot(x, w1_ref[...], preferred_element_type=jnp.float32) + b1_ref[...]
    h = _leaky_relu(h)
    # TODO(synk): nn.Dropout(0.3) omitted (identity in eval mode).

    # linear_2 + LeakyReLU(0.2)
    h = jnp.dot(h.astype(jnp.bfloat16), w2_ref[...],
                preferred_element_type=jnp.float32) + b2_ref[...]
    h = _leaky_relu(h)

    # linear_3 + LeakyReLU(0.2)
    h = jnp.dot(h.astype(jnp.bfloat16), w3_ref[...],
                preferred_element_type=jnp.float32) + b3_ref[...]
    h = _leaky_relu(h)

    # linear_4 + Sigmoid.  Contract w4_row (1, h) against h3 (tile_b, h) on the
    # last dims (q @ k^T pattern) so the result is a lane-dense (1, tile_b) row
    # (unmasked stores) instead of a (tile_b, 1) column of masked stores.
    z = jax.lax.dot_general(
        w4_ref[...], h.astype(jnp.bfloat16),
        dimension_numbers=(((1,), (1,)), ((), ())),
        preferred_element_type=jnp.float32) + b4_ref[...]
    # Exact sigmoid: exp runs on the EUP; the divide over a (1, tile_b) row is
    # negligible and keeps full accuracy near 1.0.
    o_ref[...] = (1.0 / (1.0 + jnp.exp(-z))).astype(o_ref.dtype)


def _round_up(n, m):
    return ((n + m - 1) // m) * m


def _tensorcores_per_chip():
    """Trace-time TensorCore count (2 on v7x-style chips, else 1)."""
    try:
        info = pltpu.get_tpu_info()
    except Exception:
        return 1
    for name in ("num_cores", "tensorcore_count", "num_tensorcores",
                 "core_count", "cores_per_chip", "num_cores_per_chip"):
        val = getattr(info, name, None)
        if isinstance(val, int) and val > 0:
            return val
    return 1


def _choose_tiling(batch):
    """Pick (tile_b, num_tiles).

    * Whole batch in a single tile whenever it fits in <= _MAX_TILE_B rows
      (per-step overhead ~0.35us dominates small grids; a 1024x256 bf16 tile is
      only 512 KiB of VMEM).
    * Otherwise, as few tiles as possible, shaped to the batch
      (round_up(cdiv(B, num_tiles), 128)) so padding waste stays small and the
      (1, tile_b) output row stays lane-dense / unmasked.
    * On 2-TensorCore chips (v7x) keep an even number of >= 2 parallel steps
      once the batch is big enough so the second core is not idle.
    """
    cores = _tensorcores_per_chip()
    single = _round_up(batch, 16)                 # bf16 sublane alignment
    if single <= _MAX_TILE_B and not (cores > 1 and single >= 256):
        return single, 1
    num_tiles = max(pl.cdiv(batch, _MAX_TILE_B), 2 if cores > 1 else 1)
    if cores > 1 and num_tiles % 2:
        num_tiles += 1
    tile_b = _round_up(pl.cdiv(batch, num_tiles), 128)
    num_tiles = pl.cdiv(batch, tile_b)            # 128-alignment may drop a tile
    if cores > 1 and num_tiles % 2:
        num_tiles += 1
    return tile_b, num_tiles


@jax.jit
def discriminator_forward(x_flat, params):
    """x_flat: (B, H*W), bf16 (preferred) or f32.  params: dict w1,b1,...,w4,b4.

    Returns (B, 1) float32 probabilities.
    """
    B, D = x_flat.shape
    tile_b, num_tiles = _choose_tiling(B)
    B_pad = tile_b * num_tiles

    # bf16 x halves the dominant HBM->VMEM stream.  Ideally the producer
    # already emits bf16 (the demo does); this cast is a fallback and fuses
    # with the padding pass under jit.
    if x_flat.dtype != jnp.bfloat16:
        x_flat = x_flat.astype(jnp.bfloat16)
    if B_pad != B:
        x_flat = jnp.pad(x_flat, ((0, B_pad - B), (0, 0)))

    # bf16 weights for the MXU (halves weight DMA + VMEM); biases stay f32.
    w1 = params["w1"].astype(jnp.bfloat16)
    w2 = params["w2"].astype(jnp.bfloat16)
    w3 = params["w3"].astype(jnp.bfloat16)
    w4 = params["w4"].reshape(1, -1).astype(jnp.bfloat16)      # (1, hidden) row
    b1, b2, b3, b4 = params["b1"], params["b2"], params["b3"], params["b4"]

    d1, d2, d3 = w1.shape[1], w2.shape[1], w3.shape[1]

    def batch_map(i):
        return (i, 0)

    def whole_map(i):
        return (0, 0)

    def out_map(i):
        return (0, i)

    flops = 2 * B_pad * (D * d1 + d1 * d2 + d2 * d3 + d3)
    weight_bytes = (w1.size + w2.size + w3.size + w4.size) * 2
    bias_bytes = (b1.size + b2.size + b3.size + b4.size) * 4
    bytes_accessed = B_pad * D * 2 + weight_bytes + bias_bytes + B_pad * 4

    # VMEM sized to the real footprint (double-buffered I/O + resident weights
    # + activation temps) with 2x headroom instead of a blanket 32 MiB.
    act_bytes = tile_b * (d1 + d2 + d3) * 6                     # f32 + bf16 copies
    vmem_est = 2 * (tile_b * D * 2 + tile_b * 4 + weight_bytes + bias_bytes) + act_bytes
    vmem_limit = int(min(max(2 * vmem_est, 8 * 1024 * 1024), 64 * 1024 * 1024))

    out_row = pl.pallas_call(
        discriminator_kernel,
        out_shape=jax.ShapeDtypeStruct((1, B_pad), jnp.float32),
        grid_spec=pltpu.PrefetchScalarGridSpec(
            num_scalar_prefetch=0,
            grid=(num_tiles,),
            in_specs=[
                pl.BlockSpec((tile_b, D), batch_map),   # x tile         bf16
                pl.BlockSpec(w1.shape, whole_map),      # w1 (D, 4h)     bf16
                pl.BlockSpec(b1.shape, whole_map),      # b1 (1, 4h)     f32
                pl.BlockSpec(w2.shape, whole_map),      # w2 (4h, 2h)    bf16
                pl.BlockSpec(b2.shape, whole_map),      # b2 (1, 2h)     f32
                pl.BlockSpec(w3.shape, whole_map),      # w3 (2h, h)     bf16
                pl.BlockSpec(b3.shape, whole_map),      # b3 (1, h)      f32
                pl.BlockSpec(w4.shape, whole_map),      # w4 (1, h)      bf16
                pl.BlockSpec(b4.shape, whole_map),      # b4 (1, 1)      f32
            ],
            out_specs=pl.BlockSpec((1, tile_b), out_map),
        ),
        compiler_params=pltpu.CompilerParams(
            dimension_semantics=("parallel",),
            vmem_limit_bytes=vmem_limit,
        ),
        cost_estimate=pl.CostEstimate(
            flops=flops, transcendentals=B_pad, bytes_accessed=bytes_accessed),
    )(x_flat, w1, b1, w2, b2, w3, b3, w4, b4)

    return out_row[0, :B].reshape(B, 1)


def init_params(key, in_features, hidden_dim):
    """Deterministic init mirroring PyTorch nn.Linear default (uniform +-1/sqrt(fan_in)).
    Weights stored transposed as (in, out)."""
    dims = [in_features, hidden_dim * 4, hidden_dim * 2, hidden_dim, 1]
    params = {}
    keys = jax.random.split(key, 2 * (len(dims) - 1))
    for li in range(len(dims) - 1):
        fan_in, fan_out = dims[li], dims[li + 1]
        bound = 1.0 / (fan_in ** 0.5)
        wk, bk = keys[2 * li], keys[2 * li + 1]
        params[f"w{li+1}"] = jax.random.uniform(
            wk, (fan_in, fan_out), jnp.float32, -bound, bound)
        params[f"b{li+1}"] = jax.random.uniform(
            bk, (1, fan_out), jnp.float32, -bound, bound)
    return params


def reference_forward(x_flat, params):
    """Pure-JAX reference mirroring the kernel's bf16-operand / f32-accumulate math."""
    def q(v):  # bf16 round-trip, matching the kernel's MXU operand dtype
        return v.astype(jnp.bfloat16).astype(jnp.float32)

    h = q(x_flat)
    for li in range(1, 4):
        h = jnp.dot(h, q(params[f"w{li}"]),
                    preferred_element_type=jnp.float32) + params[f"b{li}"]
        h = jnp.maximum(h, 0.2 * h)
        h = q(h)
    z = jnp.dot(h, q(params["w4"]),
                preferred_element_type=jnp.float32) + params["b4"]
    return jax.nn.sigmoid(z)


if __name__ == "__main__":
    # cfg: input_size = (16, 16), hidden_dim = 32
    H, W = 16, 16
    hidden_dim = 32
    B, C = 2, 4                      # x.view(-1, H*W) -> effective batch 8

    key = jax.random.PRNGKey(0)
    kx, kp = jax.random.split(key)
    x = jax.random.normal(kx, (B, C, H, W), jnp.float32)
    params = init_params(kp, H * W, hidden_dim)

    # "Producer emits bf16": flatten (matches torch x.view(-1, H*W)) and hand
    # the kernel a bf16 activation so its input DMA is already half-width.
    x_flat = x.reshape(-1, H * W).astype(jnp.bfloat16)    # (8, 256)

    out = discriminator_forward(x_flat, params)
    out = jax.block_until_ready(out)

    ref = reference_forward(x_flat, params)
    assert out.shape == (B * C, 1), out.shape
    assert jnp.allclose(out, ref, atol=5e-3, rtol=5e-3), (
        float(jnp.max(jnp.abs(out - ref))))

    print("KERNEL_OK")
</pallas_src>

<mosaic_0001>
module attributes {stable_mosaic.version = 11 : i64} {
  func.func @discriminator_kernel(%arg0: i32, %arg1: memref<16x256xbf16, #tpu.memory_space<vmem>>, %arg2: memref<256x128xbf16, #tpu.memory_space<vmem>>, %arg3: memref<1x128xf32, #tpu.memory_space<vmem>>, %arg4: memref<128x64xbf16, #tpu.memory_space<vmem>>, %arg5: memref<1x64xf32, #tpu.memory_space<vmem>>, %arg6: memref<64x32xbf16, #tpu.memory_space<vmem>>, %arg7: memref<1x32xf32, #tpu.memory_space<vmem>>, %arg8: memref<1x32xbf16, #tpu.memory_space<vmem>>, %arg9: memref<1x1xf32, #tpu.memory_space<vmem>>, %arg10: memref<1x16xf32, #tpu.memory_space<vmem>>) attributes {dimension_semantics = [#tpu.dimension_semantics<parallel>], iteration_bounds = array<i64: 1>, scalar_prefetch = 0 : i64, scratch_operands = 0 : i64, tpu.core_type = #tpu.core_type<tc>, window_params = [{transform_indices = @transform_0, window_bounds = array<i64: 16, 256>}, {pipeline_mode = #tpu.pipeline_mode<synchronous>, transform_indices = @transform_1, window_bounds = array<i64: 256, 128>}, {pipeline_mode = #tpu.pipeline_mode<synchronous>, transform_indices = @transform_2, window_bounds = array<i64: 1, 128>}, {pipeline_mode = #tpu.pipeline_mode<synchronous>, transform_indices = @transform_3, window_bounds = array<i64: 128, 64>}, {pipeline_mode = #tpu.pipeline_mode<synchronous>, transform_indices = @transform_4, window_bounds = array<i64: 1, 64>}, {pipeline_mode = #tpu.pipeline_mode<synchronous>, transform_indices = @transform_5, window_bounds = array<i64: 64, 32>}, {pipeline_mode = #tpu.pipeline_mode<synchronous>, transform_indices = @transform_6, window_bounds = array<i64: 1, 32>}, {pipeline_mode = #tpu.pipeline_mode<synchronous>, transform_indices = @transform_7, window_bounds = array<i64: 1, 32>}, {pipeline_mode = #tpu.pipeline_mode<synchronous>, transform_indices = @transform_8, window_bounds = array<i64: 1, 1>}, {transform_indices = @transform_9, window_bounds = array<i64: 1, 16>}]} {
    %c0 = arith.constant 0 : index
    %c0_0 = arith.constant 0 : index
    %0 = vector.load %arg1[%c0, %c0_0] : memref<16x256xbf16, #tpu.memory_space<vmem>>, vector<16x256xbf16>
    %c0_1 = arith.constant 0 : index
    %c0_2 = arith.constant 0 : index
    %1 = vector.load %arg2[%c0_1, %c0_2] : memref<256x128xbf16, #tpu.memory_space<vmem>>, vector<256x128xbf16>
    %cst = arith.constant dense<0.000000e+00> : vector<16x128xf32>
    %2 = tpu.matmul %0, %1, %cst {dimension_numbers = #tpu.dot_dimension_numbers<[1], [0], [0], [1], [0, 0, 1, 1], [], []>} : vector<16x256xbf16>, vector<256x128xbf16>, vector<16x128xf32> -> vector<16x128xf32>
    %c0_3 = arith.constant 0 : index
    %c0_4 = arith.constant 0 : index
    %3 = vector.load %arg3[%c0_3, %c0_4] : memref<1x128xf32, #tpu.memory_space<vmem>>, vector<1x128xf32>
    %4 = vector.broadcast %3 : vector<1x128xf32> to vector<16x128xf32>
    %5 = arith.addf %2, %4 : vector<16x128xf32>
    %cst_5 = arith.constant 2.000000e-01 : f32
    %6 = vector.broadcast %cst_5 : f32 to vector<16x128xf32>
    %7 = arith.mulf %6, %5 : vector<16x128xf32>
    %8 = arith.maximumf %5, %7 : vector<16x128xf32>
    %9 = arith.truncf %8 : vector<16x128xf32> to vector<16x128xbf16>
    %c0_6 = arith.constant 0 : index
    %c0_7 = arith.constant 0 : index
    %10 = vector.load %arg4[%c0_6, %c0_7] : memref<128x64xbf16, #tpu.memory_space<vmem>>, vector<128x64xbf16>
    %cst_8 = arith.constant dense<0.000000e+00> : vector<16x64xf32>
    %11 = tpu.matmul %9, %10, %cst_8 {dimension_numbers = #tpu.dot_dimension_numbers<[1], [0], [0], [1], [0, 0, 1, 1], [], []>} : vector<16x128xbf16>, vector<128x64xbf16>, vector<16x64xf32> -> vector<16x64xf32>
    %c0_9 = arith.constant 0 : index
    %c0_10 = arith.constant 0 : index
    %12 = vector.load %arg5[%c0_9, %c0_10] : memref<1x64xf32, #tpu.memory_space<vmem>>, vector<1x64xf32>
    %13 = vector.broadcast %12 : vector<1x64xf32> to vector<16x64xf32>
    %14 = arith.addf %11, %13 : vector<16x64xf32>
    %cst_11 = arith.constant 2.000000e-01 : f32
    %15 = vector.broadcast %cst_11 : f32 to vector<16x64xf32>
    %16 = arith.mulf %15, %14 : vector<16x64xf32>
    %17 = arith.maximumf %14, %16 : vector<16x64xf32>
    %18 = arith.truncf %17 : vector<16x64xf32> to vector<16x64xbf16>
    %c0_12 = arith.constant 0 : index
    %c0_13 = arith.constant 0 : index
    %19 = vector.load %arg6[%c0_12, %c0_13] : memref<64x32xbf16, #tpu.memory_space<vmem>>, vector<64x32xbf16>
    %cst_14 = arith.constant dense<0.000000e+00> : vector<16x32xf32>
    %20 = tpu.matmul %18, %19, %cst_14 {dimension_numbers = #tpu.dot_dimension_numbers<[1], [0], [0], [1], [0, 0, 1, 1], [], []>} : vector<16x64xbf16>, vector<64x32xbf16>, vector<16x32xf32> -> vector<16x32xf32>
    %c0_15 = arith.constant 0 : index
    %c0_16 = arith.constant 0 : index
    %21 = vector.load %arg7[%c0_15, %c0_16] : memref<1x32xf32, #tpu.memory_space<vmem>>, vector<1x32xf32>
    %22 = vector.broadcast %21 : vector<1x32xf32> to vector<16x32xf32>
    %23 = arith.addf %20, %22 : vector<16x32xf32>
    %cst_17 = arith.constant 2.000000e-01 : f32
    %24 = vector.broadcast %cst_17 : f32 to vector<16x32xf32>
    %25 = arith.mulf %24, %23 : vector<16x32xf32>
    %26 = arith.maximumf %23, %25 : vector<16x32xf32>
    %c0_18 = arith.constant 0 : index
    %c0_19 = arith.constant 0 : index
    %27 = vector.load %arg8[%c0_18, %c0_19] : memref<1x32xbf16, #tpu.memory_space<vmem>>, vector<1x32xbf16>
    %28 = arith.truncf %26 : vector<16x32xf32> to vector<16x32xbf16>
    %cst_20 = arith.constant dense<0.000000e+00> : vector<1x16xf32>
    %29 = tpu.matmul %27, %28, %cst_20 {dimension_numbers = #tpu.dot_dimension_numbers<[1], [1], [0], [0], [0, 0, 1, 0], [], []>} : vector<1x32xbf16>, vector<16x32xbf16>, vector<1x16xf32> -> vector<1x16xf32>
    %c0_21 = arith.constant 0 : index
    %c0_22 = arith.constant 0 : index
    %30 = vector.load %arg9[%c0_21, %c0_22] : memref<1x1xf32, #tpu.memory_space<vmem>>, vector<1x1xf32>
    %31 = vector.broadcast %30 : vector<1x1xf32> to vector<1x16xf32>
    %32 = arith.addf %29, %31 : vector<1x16xf32>
    %cst_23 = arith.constant 0.000000e+00 : f32
    %33 = vector.broadcast %cst_23 : f32 to vector<1x16xf32>
    %34 = arith.subf %33, %32 : vector<1x16xf32>
    %35 = math.exp %34 : vector<1x16xf32>
    %cst_24 = arith.constant 1.000000e+00 : f32
    %36 = vector.broadcast %cst_24 : f32 to vector<1x16xf32>
    %37 = arith.addf %36, %35 : vector<1x16xf32>
    %cst_25 = arith.constant 1.000000e+00 : f32
    %38 = vector.broadcast %cst_25 : f32 to vector<1x16xf32>
    %39 = arith.divf %38, %37 : vector<1x16xf32>
    %c0_26 = arith.constant 0 : index
    %c0_27 = arith.constant 0 : index
    %40 = vector.load %arg10[%c0_26, %c0_27] : memref<1x16xf32, #tpu.memory_space<vmem>>, vector<1x16xf32>
    tpu.vector_store %arg10[%c0_26, %c0_27], %39 {strides = array<i32>} : memref<1x16xf32, #tpu.memory_space<vmem>>, vector<1x16xf32>,
    return
  }
  func.func @transform_0(%arg0: i32) -> (i32, i32) {
    %c0_i32 = arith.constant 0 : i32
    %c0_i32_0 = arith.constant 0 : i32
    return %arg0, %c0_i32 : i32, i32
  }
  func.func @transform_1(%arg0: i32) -> (i32, i32) {
    %c0_i32 = arith.constant 0 : i32
    %c0_i32_0 = arith.constant 0 : i32
    %c0_i32_1 = arith.constant 0 : i32
    return %c0_i32, %c0_i32_0 : i32, i32
  }
  func.func @transform_2(%arg0: i32) -> (i32, i32) {
    %c0_i32 = arith.constant 0 : i32
    %c0_i32_0 = arith.constant 0 : i32
    %c0_i32_1 = arith.constant 0 : i32
    return %c0_i32, %c0_i32_0 : i32, i32
  }
  func.func @transform_3(%arg0: i32) -> (i32, i32) {
    %c0_i32 = arith.constant 0 : i32
    %c0_i32_0 = arith.constant 0 : i32
    %c0_i32_1 = arith.constant 0 : i32
    return %c0_i32, %c0_i32_0 : i32, i32
  }
  func.func @transform_4(%arg0: i32) -> (i32, i32) {
    %c0_i32 = arith.constant 0 : i32
    %c0_i32_0 = arith.constant 0 : i32
    %c0_i32_1 = arith.constant 0 : i32
    return %c0_i32, %c0_i32_0 : i32, i32
  }
  func.func @transform_5(%arg0: i32) -> (i32, i32) {
    %c0_i32 = arith.constant 0 : i32
    %c0_i32_0 = arith.constant 0 : i32
    %c0_i32_1 = arith.constant 0 : i32
    return %c0_i32, %c0_i32_0 : i32, i32
  }
  func.func @transform_6(%arg0: i32) -> (i32, i32) {
    %c0_i32 = arith.constant 0 : i32
    %c0_i32_0 = arith.constant 0 : i32
    %c0_i32_1 = arith.constant 0 : i32
    return %c0_i32, %c0_i32_0 : i32, i32
  }
  func.func @transform_7(%arg0: i32) -> (i32, i32) {
    %c0_i32 = arith.constant 0 : i32
    %c0_i32_0 = arith.constant 0 : i32
    %c0_i32_1 = arith.constant 0 : i32
    return %c0_i32, %c0_i32_0 : i32, i32
  }
  func.func @transform_8(%arg0: i32) -> (i32, i32) {
    %c0_i32 = arith.constant 0 : i32
    %c0_i32_0 = arith.constant 0 : i32
    %c0_i32_1 = arith.constant 0 : i32
    return %c0_i32, %c0_i32_0 : i32, i32
  }
  func.func @transform_9(%arg0: i32) -> (i32, i32) {
    %c0_i32 = arith.constant 0 : i32
    %c0_i32_0 = arith.constant 0 : i32
    return %c0_i32, %arg0 : i32, i32
  }
}

</mosaic_0001>

<bundles_post_ra>
// kernel: discriminator_forward.1
= control target key start
LH: loop header
LB: loop body
LE: loop exit
PB: predicated region body
PF: predicated region fallthrough
CT: control target
= control target key end

     0   :  { %v654_v1 = vmov 0.0   ;;  %vm655_vm0 = vmmov 0   ;;  %vm384_vm1 = vcmask 523264   ;;  %v656_v57 = vmov 0   ;;  %s834_s1 = inlined_call_operand.vmem [shape: bf16[256,128], index: 1, kind: input, shape index: {}]   ;;  %s835_s0 = inlined_call_operand.vmem [shape: bf16[16,256], index: 0, kind: input, shape index: {}]   ;;  %s836_s3 = inlined_call_operand.vmem [shape: bf16[128,64], index: 3, kind: input, shape index: {}]   ;;  %s837_s5 = inlined_call_operand.vmem [shape: bf16[64,32], index: 5, kind: input, shape index: {}]   ;;  %s838_s2 = inlined_call_operand.vmem [shape: f32[1,128], index: 2, kind: input, shape index: {}]   ;;  %s839_s4 = inlined_call_operand.vmem [shape: f32[1,64], index: 4, kind: input, shape index: {}]   ;;  %s840_s8 = inlined_call_operand.<no memory space> [shape: f32[1,1], index: 8, kind: input, shape index: {}]   ;;  %s841_s6 = inlined_call_operand.vmem [shape: f32[1,32], index: 6, kind: input, shape index: {}]   ;;  %s842_s7 = inlined_call_operand.vmem [shape: bf16[1,32], index: 7, kind: input, shape index: {}]   ;;  %s843_s9 = inlined_call_operand.vmem [shape: f32[1,16], index: 9, kind: output, shape index: {}]  }
   0x1   :  { %v619_v0 = vld [vmem:[%s834_s1 + $0x40] sm:$0xff]   ;;  %577 = vmatprep.subr.bf16.mxu1 %v654_v1  ;;  %v621_v3 = vld [vmem:[%s834_s1 + $0x48] sm:$0xff]   ;;  %v623_v5 = vld [vmem:[%s834_s1 + $0x50] sm:$0xff]   ;;  %593 = vmatprep.mubr.msk.bf16.mxu1 %vm655_vm0, %v654_v1  ;;  %v14_v58 = vstv %s840_s8  ;;  %vm445_vm2 = vcmask 261120   ;;  %vm498_vm3 = vcmask 122880  }
   0x2   :  { %v620_v2 = vld [vmem:[%s834_s1] sm:$0xff]   ;;  %539 = vmatprep.subr.bf16.mxu0 %v619_v0  ;;  %v622_v4 = vld [vmem:[%s834_s1 + $0x8] sm:$0xff]   ;;  %v624_v6 = vld [vmem:[%s834_s1 + $0x10] sm:$0xff]   ;;  %618 = vset.pattern.permute.xlu0 %v656_v57  ;;  %15 = vst [vmem:[#allocation2] sm:$0x1] %v14_v58 }
   0x3   :  { %540 = vmatpush3.bf16.msra.mxu0 %v620_v2  ;;  %v625_v7 = vld [vmem:[%s834_s1 + $0x58] sm:$0xff]   ;;  %v627_v9 = vld [vmem:[%s834_s1 + $0x60] sm:$0xff]   ;;  %v629_v11 = vld [vmem:[%s834_s1 + $0x68] sm:$0xff]  }
   0x4   :  { %541 = vmatprep.subr.bf16.mxu0 %v621_v3  ;;  %v626_v8 = vld [vmem:[%s834_s1 + $0x18] sm:$0xff]   ;;  %v628_v10 = vld [vmem:[%s834_s1 + $0x20] sm:$0xff]   ;;  %v630_v12 = vld [vmem:[%s834_s1 + $0x28] sm:$0xff]  }
   0x5   :  { %v637_v13 = vld [vmem:[%s835_s0 + $0x4] ss:$8 sps:$4 sm:$0xff]   ;;  %v631_v15 = vld [vmem:[%s834_s1 + $0x70] sm:$0xff]   ;;  %v633_v18 = vld [vmem:[%s834_s1 + $0x78] sm:$0xff]  }
   0x6   :  { %v638_v14 = vld [vmem:[%s836_s3] sm:$0xff]   ;;  %214 = vmatprep.mubr.bf16.mxu0 %v637_v13  ;;  %v639_v16 = vld [vmem:[%s836_s3 + $0x8] sm:$0xff]   ;;  %v632_v17 = vld [vmem:[%s834_s1 + $0x30] sm:$0xff]  }
   0x7   :  { %542 = vmatpush3.bf16.msra.mxu0 %v622_v4  ;;  %578 = vmatpush3.bf16.msra.mxu1 %v638_v14  ;;  %v640_v19 = vld [vmem:[%s836_s3 + $0x10] sm:$0xff]   ;;  %v634_v20 = vld [vmem:[%s834_s1 + $0x38] sm:$0xff]   ;;  %v635_v22 = vld [vmem:[%s835_s0] ss:$8 sps:$4 sm:$0xff]  }
   0x8   :  { %543 = vmatprep.subr.bf16.mxu0 %v623_v5  ;;  %579 = vmatprep.subr.bf16.mxu1 %v654_v1  ;;  %v641_v21 = vld [vmem:[%s836_s3 + $0x18] sm:$0xff]   ;;  %v642_v23 = vld [vmem:[%s836_s3 + $0x20] sm:$0xff]   ;;  %v643_v24 = vld [vmem:[%s836_s3 + $0x28] sm:$0xff]  }
   0x9   :  { %v644_v25 = vld [vmem:[%s836_s3 + $0x30] sm:$0xff]   ;;  %v645_v26 = vld [vmem:[%s836_s3 + $0x38] sm:$0xff]   ;;  %v646_v27 = vld [vmem:[%s837_s5] sm:$0xff]  }
   0xa   :  { %v504_v29 = vld [vmem:[%s838_s2] ss:$0 sm:$0xff]  ;;  %v647_v42 = vld [vmem:[%s837_s5 + $0x8] sm:$0xff]   ;;  %v648_v43 = vld [vmem:[%s837_s5 + $0x10] sm:$0xff]  }
   0xb   :  { %544 = vmatpush3.bf16.msra.mxu0 %v624_v6  ;;  %580 = vmatpush3.bf16.msra.mxu1 %v639_v16  ;;  %v649_v44 = vld [vmem:[%s837_s5 + $0x18] sm:$0xff]   ;;  %v523_v45 = vld [vmem:[%s839_s4] ss:$0 sm:$0xff] }
   0xc   :  { %545 = vmatprep.subr.bf16.mxu0 %v625_v7  ;;  %581 = vmatprep.subr.bf16.mxu1 %v654_v1  ;;  %v435_v59 = vld [vmem:[#allocation2] sm:$0x1] }
   0xd   :  { %438 = vperm.xlu0 %618, %v435_v59   ;;  %v532_v60 = vld [vmem:[%s841_s6] ss:$0 sm:$0xff] }
   0xf   :  { %546 = vmatpush3.bf16.msra.mxu0 %v626_v8  ;;  %582 = vmatpush3.bf16.msra.mxu1 %v640_v19 }
  0x10   :  { %547 = vmatprep.subr.bf16.mxu0 %v627_v9  ;;  %583 = vmatprep.subr.bf16.mxu1 %v654_v1  ;;  %v433_v9 = vld [vmem:[%s842_s7] sm:$0x1] }
  0x13   :  { %548 = vmatpush3.bf16.msra.mxu0 %v628_v10  ;;  %584 = vmatpush3.bf16.msra.mxu1 %v641_v21  ;;  %v441_v10 = vlaneseq }
  0x14   :  { %549 = vmatprep.subr.bf16.mxu0 %v629_v11  ;;  %585 = vmatprep.subr.bf16.mxu1 %v654_v1 }
  0x15   :  { %v442_v11 = vshrl.u32 %v441_v10, 7 }
  0x17   :  { %550 = vmatpush3.bf16.msra.mxu0 %v630_v12  ;;  %586 = vmatpush3.bf16.msra.mxu1 %v642_v23  ;;  %v443_v12 = vsub.s32 0, %v442_v11 }
  0x18   :  { %551 = vmatprep.subr.bf16.mxu0 %v631_v15  ;;  %587 = vmatprep.subr.bf16.mxu1 %v654_v1 }
  0x1b   :  { %552 = vmatpush3.bf16.msra.mxu0 %v632_v17  ;;  %588 = vmatpush3.bf16.msra.mxu1 %v643_v24 }
  0x1c   :  { %553 = vmatprep.subr.bf16.mxu0 %v633_v18  ;;  %589 = vmatprep.subr.bf16.mxu1 %v654_v1 }
  0x1f   :  { %554 = vmatpush3.bf16.msra.mxu0 %v634_v20  ;;  %590 = vmatpush3.bf16.msra.mxu1 %v644_v25 }
  0x20   :  { %597 = vmatprep.subr.bf16.mxu0 %v654_v1  ;;  %591 = vmatprep.subr.bf16.mxu1 %v654_v1 }
  0x22   :  { %215 = vmatmul.mubr.bf16.vlgmr.msra.gmra.mrb[0].mxu0 %v635_v22 }
  0x23   :  { %592 = vmatpush3.bf16.msra.mxu1 %v645_v26  ;;  %605 = vmatprep.mubr.msk.bf16.mxu0 %vm655_vm0, %v654_v1 }
  0x24   :  { %609 = vmatprep.subr.bf16.mxu1 %v654_v1  ;;  %598 = vmatpush3.bf16.msra.mxu0 %v646_v27 }
  0x25   :  { %599 = vmatprep.subr.bf16.mxu0 %v654_v1 }
  0x28   :  { %600 = vmatpush3.bf16.msra.mxu0 %v647_v42 }
  0x29   :  { %601 = vmatprep.subr.bf16.mxu0 %v654_v1 }
  0x2c   :  { %602 = vmatpush3.bf16.msra.mxu0 %v648_v43 }
  0x2d   :  { %603 = vmatprep.subr.bf16.mxu0 %v654_v1 }
  0x30   :  { %604 = vmatpush3.bf16.msra.mxu0 %v649_v44 }
  0x8c   :  { %v439_v13 = vpop.permute.xlu0 %438 }
  0x8d   :  { %v444_v14 = vrot.slane %v439_v13, %v443_v12 }
  0xf5   :  { %v555_v28 = vpop.f32.mrb[0].mxu0 }
  0xf6   :  { %v556_v30 = vpop.f32.mrb[1].mxu0 }
  0xf7   :  { %v557_v31 = vadd.f32 %v556_v30, %v555_v28  ;;  %v558_v32 = vpop.f32.mrb[2].mxu0 }
  0xf8   :  { %v559_v33 = vpop.f32.mrb[3].mxu0 }
  0xf9   :  { %v217_v34 = vadd.f32 %v557_v31, %v504_v29  ;;  %v560_v35 = vadd.f32 %v559_v33, %v558_v32 }
  0xfb   :  { %v223_v36 = vmul.f32 0.2, %v217_v34  ;;  %v220_v37 = vadd.f32 %v560_v35, %v504_v29 }
  0xfd   :  { %v224_v38 = vmul.f32 0.2, %v220_v37  ;;  %v225_v39 = vmax.f32 %v217_v34, %v223_v36 }
  0xff   :  { %v226_v40 = vmax.f32 %v220_v37, %v224_v38 }
 0x101   :  { %v227_v41 = vpack.c.bf16 %v226_v40, %v225_v39 }
 0x103   :  { %594 = vmatmul.mubr.bf16.vlgmr.msra.gmra.mrb[0].mxu1 %v227_v41 }
 0x104   :  { %611 = vmatprep.mubr.msk.bf16.mxu1 %vm655_vm0, %v654_v1 }
 0x1d6   :  { %v333_v46 = vpop.f32.mrb[0].mxu1 }
 0x1d7   :  { %v334_v47 = vadd.f32 %v523_v45, %v333_v46  ;;  %v595_v48 = vpop.f32.mrb[1].mxu1 }
 0x1d8   :  { %v336_v49 = vpop.f32.mrb[2].mxu1 }
 0x1d9   :  { %v340_v50 = vmul.f32 0.2, %v334_v47  ;;  %v337_v51 = vadd.f32 %v523_v45, %v336_v49  ;;  %v596_v52 = vpop.f32.mrb[3].mxu1 }
 0x1db   :  { %v341_v53 = vmul.f32 0.2, %v337_v51  ;;  %v342_v54 = vmax.f32 %v334_v47, %v340_v50 }
 0x1dd   :  { %v343_v55 = vmax.f32 %v337_v51, %v341_v53 }
 0x1df   :  { %v344_v56 = vpack.c.bf16 %v343_v55, %v342_v54 }
 0x1e1   :  { %606 = vmatmul.mubr.msk.bf16.vlgmr.msra.gmra.mrb[4].mxu0 %vm384_vm1, %v344_v56 }
 0x2b4   :  { %v422_v61 = vpop.f32.mrb[4].mxu0 }
 0x2b5   :  { %v423_v62 = vadd.f32 %v532_v60, %v422_v61  ;;  %v607_v63 = vpop.f32.mrb[5].mxu0 }
 0x2b6   :  { %v425_v0 = vpop.f32.mrb[6].mxu0 }
 0x2b7   :  { %v429_v1 = vmul.f32 0.2, %v423_v62  ;;  %v426_v2 = vadd.f32 %v532_v60, %v425_v0  ;;  %v608_v3 = vpop.f32.mrb[7].mxu0 }
 0x2b9   :  { %v430_v4 = vmul.f32 0.2, %v426_v2  ;;  %v431_v5 = vmax.f32 %v423_v62, %v429_v1 }
 0x2bb   :  { %v432_v6 = vmax.f32 %v426_v2, %v430_v4 }
 0x2bd   :  { %v434_v7 = vpack.c.bf16 %v432_v6, %v431_v5 }
 0x2bf   :  { %v450_v8 = vsel %vm445_vm2, %v434_v7, 0 }
 0x2c0   :  { %610 = vmatpush3.bf16.xpose.msra.mxu1 %v450_v8 }
 0x2c7   :  { %612 = vmatmul.mubr.msk.bf16.vlgmr.msra.gmra.mrb[4].mxu1 %vm445_vm2, %v433_v9 }
 0x39a   :  { %v486_v15 = vpop.f32.mrb[4].mxu1 }
 0x39b   :  { %v487_v16 = vadd.f32 %v486_v15, %v444_v14  ;;  %v613_v17 = vpop.f32.mrb[5].mxu1 }
 0x39c   :  { %v489_v18 = vpop.f32.mrb[6].mxu1 }
 0x39d   :  { %v492_v19 = vsub.f32 0.0, %v487_v16  ;;  %v614_v20 = vpop.f32.mrb[7].mxu1 }
 0x39f   :  { %v493_v21 = vmul.f32 1.442695, %v492_v19 }
 0x3a1   :  { %650 = vpow2.f32 %v493_v21 }
 0x3ab   :  { %v651_v22 = vpop.eup %650 }
 0x3ac   :  { %v495_v23 = vadd.f32 1.0, %v651_v22 }
 0x3ae   :  { %652 = vrcp.f32 %v495_v23 }
 0x3b8   :  { %v653_v24 = vpop.eup %652 }
 0x3b9   :  { %499 = vst.msk [vmem:[%s843_s9] sm:$0x1] %vm498_vm3, %v653_v24 }

</bundles_post_ra>
